<compile_context>
chip_gen: v5e
topology: v5e:2x2
jax: 0.10.0
libtpu: 0.0.40
codegen_flags: <defaults>
</compile_context>

<pallas_src>
import functools

import jax
import jax.numpy as jnp
from jax.experimental import pallas as pl
from jax.experimental.pallas import tpu as pltpu


def mlp_kernel(x_ref, w1_ref, b1_ref, w2_ref, b2_ref, w3_ref, b3_ref, o_ref,
               *, action_dim, padded_dim):
    # Activations cast to bf16 only for the MXU; all elementwise math in f32.
    x = x_ref[...].astype(jnp.bfloat16)

    h1 = jnp.dot(x, w1_ref[...], preferred_element_type=jnp.float32) + b1_ref[...]
    h1 = jnp.maximum(h1, 0.0)

    h2 = jnp.dot(h1.astype(jnp.bfloat16), w2_ref[...],
                 preferred_element_type=jnp.float32) + b2_ref[...]
    h2 = jnp.maximum(h2, 0.0)

    logits = jnp.dot(h2.astype(jnp.bfloat16), w3_ref[...],
                     preferred_element_type=jnp.float32) + b3_ref[...]

    # Only mask the padded logit columns when padding actually exists
    # (static decision -> no VALU work in the unpadded case).
    if padded_dim != action_dim:
        col = jax.lax.broadcasted_iota(jnp.int32, logits.shape, dimension=1)
        logits = jnp.where(col < action_dim, logits, -1e30)

    # max-stabilized softmax over last dim (matches F.softmax(..., dim=-1))
    m = jnp.max(logits, axis=-1, keepdims=True)
    e = jnp.exp(logits - m)
    denom = jnp.sum(e, axis=-1, keepdims=True)
    o_ref[...] = (e * pl.reciprocal(denom, approx=True)).astype(o_ref.dtype)


def mlp_forward(x, params, *, tile_b=256):
    """Fused MLP forward.

    tile_b: batch rows per grid step. 256 amortizes the ~0.35us/step grid
    overhead well on v6e/v7x; small batches are handled adaptively below.
    """
    w1, b1, w2, b2, w3, b3 = params
    B, S = x.shape
    H = w1.shape[1]
    A = w3.shape[1]

    # Lane-dense output: pad fc3's output dim to a multiple of 128 lanes.
    Ap = ((A + 127) // 128) * 128
    if Ap != A:
        w3p = jnp.zeros((H, Ap), w3.dtype).at[:, :A].set(w3)
        b3p = jnp.zeros((1, Ap), b3.dtype).at[:, :A].set(b3)
    else:
        w3p, b3p = w3, b3

    # bf16 weights: MXU-native rate + half the weight DMA bytes. Biases stay f32.
    w1b = w1.astype(jnp.bfloat16)
    w2b = w2.astype(jnp.bfloat16)
    w3b = w3p.astype(jnp.bfloat16)

    # Adaptive batch tile: don't over-tile tiny batches, keep sublane multiple of 8.
    tb = min(tile_b, ((B + 7) // 8) * 8)
    Bp = ((B + tb - 1) // tb) * tb
    xp = x if Bp == B else jnp.pad(x, ((0, Bp - B), (0, 0)))

    kernel = functools.partial(mlp_kernel, action_dim=A, padded_dim=Ap)

    out = pl.pallas_call(
        kernel,
        out_shape=jax.ShapeDtypeStruct((Bp, Ap), jnp.float32),
        grid_spec=pltpu.PrefetchScalarGridSpec(
            num_scalar_prefetch=0,
            grid=(Bp // tb,),
            in_specs=[
                pl.BlockSpec((tb, S), lambda i: (i, 0)),   # x tile (pipelined)
                pl.BlockSpec((S, H), lambda i: (0, 0)),    # w1 (VMEM-resident)
                pl.BlockSpec((1, H), lambda i: (0, 0)),    # b1
                pl.BlockSpec((H, H), lambda i: (0, 0)),    # w2
                pl.BlockSpec((1, H), lambda i: (0, 0)),    # b2
                pl.BlockSpec((H, Ap), lambda i: (0, 0)),   # w3 (padded, lane-dense)
                pl.BlockSpec((1, Ap), lambda i: (0, 0)),   # b3 (padded)
            ],
            out_specs=pl.BlockSpec((tb, Ap), lambda i: (i, 0)),
        ),
        compiler_params=pltpu.CompilerParams(
            dimension_semantics=("parallel",),  # shards batch tiles across v7x's 2 TCs
        ),
    )(xp, w1b, b1, w2b, b2, w3b, b3p)

    return out[:B, :A]


def init_mlp_params(key, state_dim, action_dim, hidden_dim=128):
    """Deterministic init mimicking nn.Linear's default U(-1/sqrt(fan_in), ...)."""
    def linear(k, fan_in, fan_out):
        kw, kb = jax.random.split(k)
        bound = 1.0 / jnp.sqrt(float(fan_in))
        # stored as (in, out); biases as (1, out) for TPU-friendly 2D layout
        w = jax.random.uniform(kw, (fan_in, fan_out), jnp.float32, -bound, bound)
        b = jax.random.uniform(kb, (1, fan_out), jnp.float32, -bound, bound)
        return w, b

    k1, k2, k3 = jax.random.split(key, 3)
    w1, b1 = linear(k1, state_dim, hidden_dim)
    w2, b2 = linear(k2, hidden_dim, hidden_dim)
    w3, b3 = linear(k3, hidden_dim, action_dim)
    return (w1, b1, w2, b2, w3, b3)


def mlp_reference_f32(x, params):
    w1, b1, w2, b2, w3, b3 = params
    h1 = jnp.maximum(x @ w1 + b1, 0.0)
    h2 = jnp.maximum(h1 @ w2 + b2, 0.0)
    return jax.nn.softmax(h2 @ w3 + b3, axis=-1)


def mlp_reference_bf16(x, params):
    """Reference matching the kernel's bf16-operand / f32-accumulate matmuls."""
    w1, b1, w2, b2, w3, b3 = params
    bf = jnp.bfloat16
    h1 = jnp.maximum(
        jnp.dot(x.astype(bf), w1.astype(bf), preferred_element_type=jnp.float32) + b1, 0.0)
    h2 = jnp.maximum(
        jnp.dot(h1.astype(bf), w2.astype(bf), preferred_element_type=jnp.float32) + b2, 0.0)
    logits = jnp.dot(h2.astype(bf), w3.astype(bf), preferred_element_type=jnp.float32) + b3
    return jax.nn.softmax(logits, axis=-1)


if __name__ == "__main__":
    key = jax.random.PRNGKey(0)
    k_params, k_x = jax.random.split(key)

    batch = 20          # not a multiple of the tile -> exercises pad + slice path
    state_dim = 16
    action_dim = 8
    hidden_dim = 128

    params = init_mlp_params(k_params, state_dim, action_dim, hidden_dim)
    x = jax.random.normal(k_x, (batch, state_dim), jnp.float32)

    # tile_b=8 keeps shapes tiny while still exercising a multi-step batch grid.
    out = mlp_forward(x, params, tile_b=8)
    out = jax.block_until_ready(out)

    assert out.shape == (batch, action_dim)

    ref_bf16 = mlp_reference_bf16(x, params)
    ref_f32 = mlp_reference_f32(x, params)
    # Tight check vs bf16-matmul reference (accounts for MXU bf16 operands);
    # loose sanity check vs full-f32 reference.
    assert jnp.allclose(out, ref_bf16, atol=5e-3, rtol=5e-3), "mismatch vs bf16 reference"
    assert jnp.allclose(out, ref_f32, atol=3e-2, rtol=3e-2), "mismatch vs f32 reference"
    # rows sum to 1 (softmax); approx reciprocal keeps this within ~1e-3
    assert jnp.allclose(jnp.sum(out, axis=-1), 1.0, atol=1e-2)

    print("KERNEL_OK")
</pallas_src>

<mosaic_0001>
module attributes {stable_mosaic.version = 11 : i64} {
  func.func @mlp_kernel(%arg0: i32, %arg1: memref<8x16xf32, #tpu.memory_space<vmem>>, %arg2: memref<16x128xbf16, #tpu.memory_space<vmem>>, %arg3: memref<1x128xf32, #tpu.memory_space<vmem>>, %arg4: memref<128x128xbf16, #tpu.memory_space<vmem>>, %arg5: memref<1x128xf32, #tpu.memory_space<vmem>>, %arg6: memref<128x128xbf16, #tpu.memory_space<vmem>>, %arg7: memref<1x128xf32, #tpu.memory_space<vmem>>, %arg8: memref<8x128xf32, #tpu.memory_space<vmem>>) attributes {dimension_semantics = [#tpu.dimension_semantics<parallel>], iteration_bounds = array<i64: 3>, scalar_prefetch = 0 : i64, scratch_operands = 0 : i64, tpu.core_type = #tpu.core_type<tc>, window_params = [{transform_indices = @transform_0, window_bounds = array<i64: 8, 16>}, {pipeline_mode = #tpu.pipeline_mode<synchronous>, transform_indices = @transform_1, window_bounds = array<i64: 16, 128>}, {pipeline_mode = #tpu.pipeline_mode<synchronous>, transform_indices = @transform_2, window_bounds = array<i64: 1, 128>}, {pipeline_mode = #tpu.pipeline_mode<synchronous>, transform_indices = @transform_3, window_bounds = array<i64: 128, 128>}, {pipeline_mode = #tpu.pipeline_mode<synchronous>, transform_indices = @transform_4, window_bounds = array<i64: 1, 128>}, {pipeline_mode = #tpu.pipeline_mode<synchronous>, transform_indices = @transform_5, window_bounds = array<i64: 128, 128>}, {pipeline_mode = #tpu.pipeline_mode<synchronous>, transform_indices = @transform_6, window_bounds = array<i64: 1, 128>}, {transform_indices = @transform_7, window_bounds = array<i64: 8, 128>}]} {
    %c0 = arith.constant 0 : index
    %c0_0 = arith.constant 0 : index
    %0 = vector.load %arg1[%c0, %c0_0] : memref<8x16xf32, #tpu.memory_space<vmem>>, vector<8x16xf32>
    %1 = arith.truncf %0 : vector<8x16xf32> to vector<8x16xbf16>
    %c0_1 = arith.constant 0 : index
    %c0_2 = arith.constant 0 : index
    %2 = vector.load %arg2[%c0_1, %c0_2] : memref<16x128xbf16, #tpu.memory_space<vmem>>, vector<16x128xbf16>
    %cst = arith.constant dense<0.000000e+00> : vector<8x128xf32>
    %3 = tpu.matmul %1, %2, %cst {dimension_numbers = #tpu.dot_dimension_numbers<[1], [0], [0], [1], [0, 0, 1, 1], [], []>} : vector<8x16xbf16>, vector<16x128xbf16>, vector<8x128xf32> -> vector<8x128xf32>
    %c0_3 = arith.constant 0 : index
    %c0_4 = arith.constant 0 : index
    %4 = vector.load %arg3[%c0_3, %c0_4] : memref<1x128xf32, #tpu.memory_space<vmem>>, vector<1x128xf32>
    %5 = vector.broadcast %4 : vector<1x128xf32> to vector<8x128xf32>
    %6 = arith.addf %3, %5 : vector<8x128xf32>
    %cst_5 = arith.constant 0.000000e+00 : f32
    %7 = vector.broadcast %cst_5 : f32 to vector<8x128xf32>
    %8 = arith.maximumf %6, %7 : vector<8x128xf32>
    %9 = arith.truncf %8 : vector<8x128xf32> to vector<8x128xbf16>
    %c0_6 = arith.constant 0 : index
    %c0_7 = arith.constant 0 : index
    %10 = vector.load %arg4[%c0_6, %c0_7] : memref<128x128xbf16, #tpu.memory_space<vmem>>, vector<128x128xbf16>
    %cst_8 = arith.constant dense<0.000000e+00> : vector<8x128xf32>
    %11 = tpu.matmul %9, %10, %cst_8 {dimension_numbers = #tpu.dot_dimension_numbers<[1], [0], [0], [1], [0, 0, 1, 1], [], []>} : vector<8x128xbf16>, vector<128x128xbf16>, vector<8x128xf32> -> vector<8x128xf32>
    %c0_9 = arith.constant 0 : index
    %c0_10 = arith.constant 0 : index
    %12 = vector.load %arg5[%c0_9, %c0_10] : memref<1x128xf32, #tpu.memory_space<vmem>>, vector<1x128xf32>
    %13 = vector.broadcast %12 : vector<1x128xf32> to vector<8x128xf32>
    %14 = arith.addf %11, %13 : vector<8x128xf32>
    %cst_11 = arith.constant 0.000000e+00 : f32
    %15 = vector.broadcast %cst_11 : f32 to vector<8x128xf32>
    %16 = arith.maximumf %14, %15 : vector<8x128xf32>
    %17 = arith.truncf %16 : vector<8x128xf32> to vector<8x128xbf16>
    %c0_12 = arith.constant 0 : index
    %c0_13 = arith.constant 0 : index
    %18 = vector.load %arg6[%c0_12, %c0_13] : memref<128x128xbf16, #tpu.memory_space<vmem>>, vector<128x128xbf16>
    %cst_14 = arith.constant dense<0.000000e+00> : vector<8x128xf32>
    %19 = tpu.matmul %17, %18, %cst_14 {dimension_numbers = #tpu.dot_dimension_numbers<[1], [0], [0], [1], [0, 0, 1, 1], [], []>} : vector<8x128xbf16>, vector<128x128xbf16>, vector<8x128xf32> -> vector<8x128xf32>
    %c0_15 = arith.constant 0 : index
    %c0_16 = arith.constant 0 : index
    %20 = vector.load %arg7[%c0_15, %c0_16] : memref<1x128xf32, #tpu.memory_space<vmem>>, vector<1x128xf32>
    %21 = vector.broadcast %20 : vector<1x128xf32> to vector<8x128xf32>
    %22 = arith.addf %19, %21 : vector<8x128xf32>
    %23 = tpu.iota {dimensions = array<i32: 1>} : vector<8x128xi32>
    %c8_i32 = arith.constant 8 : i32
    %24 = vector.broadcast %c8_i32 : i32 to vector<8x128xi32>
    %25 = arith.cmpi slt, %23, %24 : vector<8x128xi32>
    %cst_17 = arith.constant -1.000000e+30 : f32
    %26 = vector.broadcast %cst_17 : f32 to vector<8x128xf32>
    %27 = arith.select %25, %22, %26 : vector<8x128xi1>, vector<8x128xf32>
    %cst_18 = arith.constant dense<0xFF800000> : vector<8xf32>
    %28 = vector.multi_reduction <maximumf>, %27, %cst_18 [1] : vector<8x128xf32> to vector<8xf32>
    %29 = vector.shape_cast %28 : vector<8xf32> to vector<8x1xf32>
    %30 = vector.broadcast %29 : vector<8x1xf32> to vector<8x128xf32>
    %31 = arith.subf %27, %30 : vector<8x128xf32>
    %32 = math.exp %31 : vector<8x128xf32>
    %cst_19 = arith.constant dense<0.000000e+00> : vector<8xf32>
    %33 = vector.multi_reduction <add>, %32, %cst_19 [1] : vector<8x128xf32> to vector<8xf32>
    %34 = vector.shape_cast %33 : vector<8xf32> to vector<8x1xf32>
    %35 = tpu.reciprocal %34 {approx = true} : vector<8x1xf32> -> vector<8x1xf32>
    %36 = vector.broadcast %35 : vector<8x1xf32> to vector<8x128xf32>
    %37 = arith.mulf %32, %36 : vector<8x128xf32>
    %c0_20 = arith.constant 0 : index
    %c0_21 = arith.constant 0 : index
    %38 = vector.load %arg8[%c0_20, %c0_21] : memref<8x128xf32, #tpu.memory_space<vmem>>, vector<8x128xf32>
    tpu.vector_store %arg8[%c0_20, %c0_21], %37 {strides = array<i32>} : memref<8x128xf32, #tpu.memory_space<vmem>>, vector<8x128xf32>,
    return
  }
  func.func @transform_0(%arg0: i32) -> (i32, i32) {
    %c0_i32 = arith.constant 0 : i32
    %c0_i32_0 = arith.constant 0 : i32
    return %arg0, %c0_i32 : i32, i32
  }
  func.func @transform_1(%arg0: i32) -> (i32, i32) {
    %c0_i32 = arith.constant 0 : i32
    %c0_i32_0 = arith.constant 0 : i32
    %c0_i32_1 = arith.constant 0 : i32
    return %c0_i32, %c0_i32_0 : i32, i32
  }
  func.func @transform_2(%arg0: i32) -> (i32, i32) {
    %c0_i32 = arith.constant 0 : i32
    %c0_i32_0 = arith.constant 0 : i32
    %c0_i32_1 = arith.constant 0 : i32
    return %c0_i32, %c0_i32_0 : i32, i32
  }
  func.func @transform_3(%arg0: i32) -> (i32, i32) {
    %c0_i32 = arith.constant 0 : i32
    %c0_i32_0 = arith.constant 0 : i32
    %c0_i32_1 = arith.constant 0 : i32
    return %c0_i32, %c0_i32_0 : i32, i32
  }
  func.func @transform_4(%arg0: i32) -> (i32, i32) {
    %c0_i32 = arith.constant 0 : i32
    %c0_i32_0 = arith.constant 0 : i32
    %c0_i32_1 = arith.constant 0 : i32
    return %c0_i32, %c0_i32_0 : i32, i32
  }
  func.func @transform_5(%arg0: i32) -> (i32, i32) {
    %c0_i32 = arith.constant 0 : i32
    %c0_i32_0 = arith.constant 0 : i32
    %c0_i32_1 = arith.constant 0 : i32
    return %c0_i32, %c0_i32_0 : i32, i32
  }
  func.func @transform_6(%arg0: i32) -> (i32, i32) {
    %c0_i32 = arith.constant 0 : i32
    %c0_i32_0 = arith.constant 0 : i32
    %c0_i32_1 = arith.constant 0 : i32
    return %c0_i32, %c0_i32_0 : i32, i32
  }
  func.func @transform_7(%arg0: i32) -> (i32, i32) {
    %c0_i32 = arith.constant 0 : i32
    %c0_i32_0 = arith.constant 0 : i32
    return %arg0, %c0_i32 : i32, i32
  }
}

</mosaic_0001>

<bundles_post_ra>
// kernel: tpu_custom_call.1
= control target key start
LH: loop header
LB: loop body
LE: loop exit
PB: predicated region body
PF: predicated region fallthrough
CT: control target
= control target key end

     0   :  { %12 = vsyncpa [#allocation3], 0  ;;  %s1084_s0 = inlined_call_operand.vmem [shape: f32[24,16], index: 0, kind: input, shape index: {}]   ;;  %s1085_s1 = inlined_call_operand.vmem [shape: bf16[16,128], index: 1, kind: input, shape index: {}]   ;;  %s1086_s2 = inlined_call_operand.vmem [shape: f32[1,128], index: 2, kind: input, shape index: {}]   ;;  %s1087_s3 = inlined_call_operand.hbm [shape: bf16[128,128], index: 3, kind: input, shape index: {}]   ;;  %s1088_s4 = inlined_call_operand.vmem [shape: f32[1,128], index: 4, kind: input, shape index: {}]   ;;  %s1089_s5 = inlined_call_operand.hbm [shape: bf16[128,128], index: 5, kind: input, shape index: {}]   ;;  %s1090_s6 = inlined_call_operand.vmem [shape: f32[1,128], index: 6, kind: input, shape index: {}]   ;;  %s1091_s7 = inlined_call_operand.hbm [shape: f32[24,128], index: 7, kind: output, shape index: {}]  }
   0x1   :  { %13 = vsyncpa [#allocation6], 0 }
   0x2   :  { %14 = vsyncpa [#allocation4], 0 }
   0x3   :  { %16 = vsyncpa [#allocation4 + $0x1], 0  ;;  %s962_s24 = smov 0   ;;  %s964_s25 = smov 0  }
   0x4   :  { %s966_s26 = smov 0   ;;  %s968_s27 = smov 0  }
   0x5 LB: > { %s983_s28 = sadd.s32 4294967295, %s916_s27   ;;  %s617_s29 = sadd.s32 4294967294, %s916_s27   ;;  %s916_s27 = sphi %s968_s27, %s1098_s27   ;;  %s912_s26 = sphi %s966_s26, %s1097_s26   ;;  %s908_s25 = sphi %s964_s25, %s1096_s25   ;;  %s904_s24 = sphi %s962_s24, %s1095_s24  }
   0x6   : > { %s987_s30 = sadd.s32 1, %s916_s27   ;;  %s181_s8 = sadd.s32 1, %s912_s26 }
   0x7   : > { %s178_s9 = ssub.s32 %s916_s27, %s987_s30  ;;  %p191_p0 = scmp.ne.s32.totalorder %s912_s26, %s908_s25 }
   0x8   : > { %p179_p1 = scmp.eq.s32.totalorder %s178_s9, 0  ;;  %p192_p2 = scmp.eq.s32.totalorder %s983_s28, 2 }
   0x9   : > { %p197_p3 = scmp.ne.s32.totalorder %s908_s25, %s904_s24  ;;  %p198_p4 = scmp.eq.s32.totalorder %s617_s29, 2 }
   0xa   : > { %s998_s10 = scalar_select %p179_p1, %s912_s26, %s181_s8  }
   0xb   : > { %p1000_p5 = por %p192_p2, %p191_p0  ;;  %p1004_p6 = por %p198_p4, %p197_p3 }
   0xc   : > { %p618_p7 = scmp.ge.s32.totalorder %s916_s27, 1  ;;  %p205_p8 = scmp.lt.s32.totalorder %s916_s27, 4 }
   0xd   : > { %p738_p9 = scmp.eq.s32.totalorder %s983_s28, 0  ;;  %s222_s16 = sshll.u32 %s1087_s3, 4  ;;  %s223_s16 = int_to_ptr.hbm [resolvable:$true] %s222_s16 }
   0xe   : > { %p1011_p10 = pnand %p618_p7, %p205_p8  ;;  %s918_s17 = smov [#allocation2]  }
   0xf   : > { %s224_s18 = sshll.u32 %s918_s17, 4  ;;  %s239_s21 = sshll.u32 %s1089_s5, 4  ;;  %s225_s18 = int_to_ptr.vmem [resolvable:$true] %s224_s18  ;;  %s240_s21 = int_to_ptr.hbm [resolvable:$true] %s239_s21 }
  0x10   : > { %p727_p11 = pneg %p1011_p10  ;;  %s919_s22 = smov 64  }
  0x11   : > { %s920_s23 = smov 4   ;;  %s921_s29 = smov [#allocation5]  }
  0x12   : > { %p728_p12 = pnand %p738_p9, %p727_p11  ;;  %s241_s8 = sshll.u32 %s921_s29, 4  ;;  %s242_s8 = int_to_ptr.vmem [resolvable:$true] %s241_s8 }
  0x13   : > { %267 = sbr.rel (%p1011_p10) target bundleno = 690 (0x2b2), region = 48 }
  0x14   : > { %730 = dma.hbm_to_vmem [thread:$0]  (!%p728_p12), %s223_s16, 1024, %s225_s18, [#allocation3], %s919_s22, %s919_s22, %s920_s23  }
  0x15   : > { %733 = dma.hbm_to_vmem [thread:$0]  (!%p728_p12), %s240_s21, 1024, %s242_s8, [#allocation6], %s919_s22, %s919_s22, %s920_s23  }
  0x18   : > { %891 = dma.done.wait (%p738_p9), [#allocation3], 1024  }
  0x19   : > { %893 = vsyncadd (%p738_p9), [#allocation3], 4294966272 }
  0x1a   : > { %895 = dma.done.wait (%p738_p9), [#allocation6], 1024  }
  0x1b   : > { %897 = vsyncadd (%p738_p9), [#allocation6], 4294966272  ;;  %p304_p13 = scmp.lt.s32.totalorder %s983_s28, 2  ;;  %v700_v0 = vld [vmem:[%s1085_s1] sm:$0xff]  ;;  %v708_v2 = vld [vmem:[#allocation2 + $0x38] sm:$0xff]  ;;  %vm323_vm0 = vcmask 130048   ;;  %v506_v31 = vlaneseq }
  0x1c   : > { %334 = vmatpush.bf16.msra.mxu0 %v700_v0  ;;  %410 = vmatpush.bf16.msra.mxu1 %v708_v2  ;;  %v707_v4 = vld [vmem:[#allocation2 + $0x30] sm:$0xff]  ;;  %v706_v5 = vld [vmem:[#allocation2 + $0x28] sm:$0xff]  ;;  %v705_v6 = vld [vmem:[#allocation2 + $0x20] sm:$0xff]  ;;  %s301_s8 = sand.u32 1, %s908_s25   ;;  %s866_s29 = scalar_lea.hbm %s1091_s7, 24 }
  0x1d   : > { %s305_s9 = scalar_select %p304_p13, %s983_s28, 2  ;;  %v704_v7 = vld [vmem:[#allocation2 + $0x18] sm:$0xff]  ;;  %v703_v8 = vld [vmem:[#allocation2 + $0x10] sm:$0xff]  ;;  %v702_v9 = vld [vmem:[#allocation2 + $0x8] sm:$0xff]  ;;  %v507_v32 = vand.u32 127, %v506_v31 }
  0x1e   : > { %v701_v10 = vld [vmem:[#allocation2] sm:$0xff]  ;;  %v716_v11 = vld [vmem:[#allocation5 + $0x38] sm:$0xff]  ;;  %v715_v12 = vld [vmem:[#allocation5 + $0x30] sm:$0xff]  ;;  %s521_s20 = scalar_lea.sflag [#allocation4], %s301_s8 }
  0x1f   : > { %s626_s14 = sshll.u32 %s305_s9, 3  ;;  %493 = vmatpush.bf16.msra.mxu2 %v716_v11  ;;  %v714_v13 = vld [vmem:[#allocation5 + $0x28] sm:$0xff]  ;;  %v713_v14 = vld [vmem:[#allocation5 + $0x20] sm:$0xff]  ;;  %v712_v15 = vld [vmem:[#allocation5 + $0x18] sm:$0xff]  ;;  %vm508_vm1 = vcmp.lt.s32.totalorder %v507_v32, 8  ;;  %s625_s9 = sshll.u32 %s301_s8, 3 }
  0x20   : > { %s307_s16 = scalar_lea.vmem %s1084_s0, %s626_s14  ;;  %411 = vmatpush.bf16.msra.mxu1 %v707_v4  ;;  %v711_v16 = vld [vmem:[#allocation5 + $0x10] sm:$0xff]  ;;  %v779_v17 = vld [vmem:[%s1086_s2] ss:$0 sm:$0xff]  ;;  %v710_v23 = vld [vmem:[#allocation5 + $0x8] sm:$0xff]  ;;  %s697_s14 = sshll.u32 %s983_s28, 3 }
  0x21   : > { %v309_v1 = vld [vmem:[%s307_s16] sm:$0xff]  ;;  %s531_s16 = scalar_lea.hbm %s1091_s7, %s697_s14  ;;  %s303_s17 = scalar_lea.vmem [#allocation7], %s625_s9 }
  0x22   : > { %v310_v3 = vpack.c.bf16 %v309_v1, %v309_v1  ;;  %v709_v24 = vld [vmem:[#allocation5] sm:$0xff]  ;;  %s533_s18 = sshll.u32 %s303_s17, 4  ;;  %s535_s19 = sshll.u32 %s531_s16, 4  ;;  %s534_s18 = int_to_ptr.vmem [resolvable:$true] %s533_s18  ;;  %s536_s19 = int_to_ptr.hbm [resolvable:$true] %s535_s19 }
  0x23   : > { %494 = vmatpush.bf16.msra.mxu2 %v715_v12  ;;  %v780_v25 = vld [vmem:[%s1088_s4] ss:$0 sm:$0xff]  ;;  %s860_s21 = sshra.s32 %s536_s19, 4  ;;  %s861_s21 = int_to_ptr.hbm [resolvable:$true] %s860_s21 }
  0x24   : > { %631 = vmatmul.msk.bf16.vlgmr.msra.gmra.mxu0 %vm323_vm0, %v310_v3  ;;  %412 = vmatpush.bf16.msra.mxu1 %v706_v5  ;;  %v781_v33 = vld [vmem:[%s1090_s6] ss:$0 sm:$0xff]  ;;  %s862_s22 = scalar_lea.hbm %s861_s21, 8  ;;  %p867_p3 = scmp.lt.s32.totalorder %s861_s21, %s1091_s7 }
  0x25   : > { %p863_p0 = scmp.ne.s32.totalorder %s861_s21, %s862_s22  ;;  %p868_p4 = scmp.lt.s32.totalorder %s866_s29, %s862_s22 }
  0x27   : > { %495 = vmatpush.bf16.msra.mxu2 %v714_v13  ;;  %p864_p1 = pnand %p863_p0, %p1000_p5  ;;  %p869_p7 = por %p868_p4, %p867_p3 }
  0x28   : > { %413 = vmatpush.bf16.msra.mxu1 %v705_v6 }
  0x29   : > { %p865_p2 = pneg %p864_p1 }
  0x2b   : > { %496 = vmatpush.bf16.msra.mxu2 %v713_v14  ;;  %p870_p8 = pnand %p869_p7, %p865_p2 }
  0x2c   : > { %414 = vmatpush.bf16.msra.mxu1 %v704_v7 }
  0x2f   : > { %497 = vmatpush.bf16.msra.mxu2 %v712_v15 }
  0x30   : > { %415 = vmatpush.bf16.msra.mxu1 %v703_v8 }
  0x33   : > { %498 = vmatpush.bf16.msra.mxu2 %v711_v16 }
  0x34   : > { %416 = vmatpush.bf16.msra.mxu1 %v702_v9 }
  0x37   : > { %499 = vmatpush.bf16.msra.mxu2 %v710_v23 }
  0x38   : > { %417 = vmatpush.bf16.msra.mxu1 %v701_v10 }
  0x3b   : > { %500 = vmatpush.bf16.msra.mxu2 %v709_v24 }
  0xa1   : > { %v336_v18 = vpop.f32.mrf.mxu0 }
  0xa2   : > { %v337_v19 = vadd.f32 %v779_v17, %v336_v18 }
  0xa4   : > { %v340_v20 = vmax.f32 %v337_v19, 0.0 }
  0xa6   : > { %v341_v21 = vpack.c.bf16 %v340_v20, %v340_v20 }
  0xa8   : > { %418 = vmatmul.bf16.vlgmr.msra.gmra.mxu1 %v341_v21 }
  0xa9   : > { %v338_v22 = vpop.f32.mrf.mxu0 }
 0x125   : > { %v419_v26 = vpop.f32.mrf.mxu1 }
 0x126   : > { %v420_v27 = vadd.f32 %v780_v25, %v419_v26 }
 0x128   : > { %v423_v28 = vmax.f32 %v420_v27, 0.0 }
 0x12a   : > { %v424_v29 = vpack.c.bf16 %v423_v28, %v423_v28 }
 0x12c   : > { %501 = vmatmul.bf16.vlgmr.msra.gmra.mxu2 %v424_v29 }
 0x12d   : > { %v421_v30 = vpop.f32.mrf.mxu1 }
 0x1af   : > { %v502_v34 = vpop.f32.mrf.mxu2 }
 0x1b0   : > { %v503_v35 = vadd.f32 %v781_v33, %v502_v34 }
 0x1b2   : > { %v509_v36 = vsel %vm508_vm1, %v503_v35, -1e+30 }
 0x1b3   : > { %510 = vmax.xlane.f32.xlu0 %v509_v36 }
 0x1b7   : > { %v504_v37 = vpop.f32.mrf.mxu2 }
 0x226   : > { %v511_v38 = vpop.xlane.xlu0 %510 }
 0x227   : > { %v512_v39 = vsub.f32 %v509_v36, %v511_v38 }
 0x229   : > { %v513_v40 = vmul.f32 1.442695, %v512_v39 }
 0x22b   : > { %782 = vpow2.f32 %v513_v40 }
 0x231   : > { %v783_v41 = vpop.eup %782 }
 0x232   : > { %515 = vadd.xlane.f32.xlu0 %v783_v41 }
 0x2a5   : > { %v516_v42 = vpop.xlane.xlu0 %515 }
 0x2a6   : > { %784 = vrcp.f32 %v516_v42 }
 0x2ac   : > { %v785_v43 = vpop.eup %784 }
 0x2ad   : > { %v518_v44 = vmul.f32 %v785_v43, %v783_v41 }
 0x2af   : > { %519 = vst [vmem:[%s303_s17] sm:$0xff] %v518_v44 }
 0x2b0   : > { %873 = shalt.err (!%p870_p8)
}
 0x2b1   : > { %725 = dma.vmem_to_hbm [thread:$0]  (%p1000_p5), %s534_s18, 128, %s536_s19, %s521_s20  }
 0x2b2 PF: > { %p742_p9 = scmp.ge.s32.totalorder %s916_s27, 2  ;;  %s547_s8 = sand.u32 1, %s904_s24  }
 0x2b3   : > { %s548_s15 = scalar_lea.sflag [#allocation4], %s547_s8 }
 0x2b4   : > { %p735_p10 = pnand %p742_p9, %p1004_p6 }
 0x2b6   : > { %p736_p11 = pneg %p735_p10 }
 0x2b8   : > { %899 = dma.done.wait (%p736_p11), %s548_s15, 128  }
 0x2b9   : > { %901 = vsyncadd (%p736_p11), %s548_s15, 4294967168  ;;  %p19_p12 = scmp.ge.s32.totalorder %s987_s30, 5   ;;  %s1095_s24 = smov %s908_s25 }
 0x2ba   : > { %s1096_s25 = smov %s912_s26  ;;  %s1097_s26 = smov %s998_s10 }
 0x2bb   : > { %s1098_s27 = smov %s987_s30  ;;  %21 = sbr.rel (!%p19_p12) target bundleno = 5 (0x5), region = 92 }
 0x2c0   :  { %554 = vsyncpa [#allocation3], 1 }
 0x2c1   :  { %556 = vsyncpa [#allocation3 + $0x1], 1 }
 0x2c2   :  { %557 = vsyncpa [#allocation6], 1 }
 0x2c3   :  { %558 = vsyncpa [#allocation4], 1 }
 0x2c4   :  { %560 = vsyncpa [#allocation4 + $0x1], 1 }

</bundles_post_ra>
